<compile_context>
chip_gen: v6e
topology: v6e:2x2x1
jax: 0.10.0
libtpu: 0.0.40
codegen_flags: <defaults>
</compile_context>

<pallas_src>
import jax
import jax.numpy as jnp
from jax.experimental import pallas as pl
from jax.experimental.pallas import tpu as pltpu

LANE = 128


def _round_up(a, m):
    return ((a + m - 1) // m) * m


def _relu_mask_kernel(x_ref, y_ref, mask_ref):
    x = x_ref[...]
    mask = (x > 0).astype(x.dtype)
    mask_ref[...] = mask
    y_ref[...] = x * mask  # x*mask (not where) keeps NaN*0 = NaN like the reference


def _tpu_params():
    """(parallel TensorCores, target block bytes per array, scoped VMEM limit)."""
    cores, blk, vmem = 1, 2 * 1024 * 1024, 32 * 1024 * 1024  # conservative default
    try:
        kind = jax.devices()[0].device_kind.lower()
    except Exception:
        return cores, blk, vmem
    if "v5" in kind or "v6" in kind:
        # 128 MiB physical VMEM, 1 TC per device: bigger blocks buy the last
        # few % of HBM roofline; no point splitting medium shapes.
        return 1, 4 * 1024 * 1024, 64 * 1024 * 1024
    if "v7" in kind or "v4" in kind:
        # 2 TensorCores share the grid under dimension_semantics="parallel";
        # keep ~2 MiB blocks (v7x has only 64 MiB VMEM per TC).
        return 2, 2 * 1024 * 1024, 32 * 1024 * 1024
    return cores, blk, vmem


def _choose_block_rows(rows, sublane, target_rows, cores):
    """Rows per block: big enough to amortize ~0.35us/step grid overhead,
    small enough that every TensorCore gets >=2 pipelined steps."""
    if cores > 1:
        min_steps = 2 * cores
        if rows >= min_steps * target_rows:
            return target_rows
        if rows >= min_steps * sublane:
            return min(target_rows, _round_up(pl.cdiv(rows, min_steps), sublane))
        return rows
    return target_rows if rows > target_rows else rows


def relu_with_mask(x):
    """Returns (x * mask, mask) with mask = (x > 0).astype(x.dtype)."""
    orig_shape = x.shape
    dtype = x.dtype
    n = x.size
    if n == 0:  # empty tensor: nothing for the kernel to do (avoid cdiv(0, 0))
        return jnp.zeros(orig_shape, dtype), jnp.zeros(orig_shape, dtype)

    itemsize = jnp.dtype(dtype).itemsize
    sublane = max(8, 32 // itemsize)  # 8 for f32, 16 for bf16, 32 for int8
    cores, target_block_bytes, vmem_limit = _tpu_params()

    # ---- build a zero-copy 2-D lane-friendly view of x ----------------------
    padded_tail = False
    if n % LANE == 0:
        x2d = jnp.reshape(x, (n // LANE, LANE))  # fully lane-dense fast path
    else:
        if x.ndim >= 2:
            cols = orig_shape[-1]
            x2d = jnp.reshape(x, (n // cols, cols))  # collapse leading dims (free)
        else:
            x2d = jnp.reshape(x, (1, n))
        vmem_row_bytes = _round_up(x2d.shape[1], LANE) * itemsize
        if vmem_row_bytes * sublane > target_block_bytes:
            # Pathological: huge unaligned last dim -> even one sublane-tall
            # block would blow VMEM. Fall back to pad + slice.
            # TODO(synk): tile the last dim with masked edge stores instead.
            pad = LANE - n % LANE
            x2d = jnp.reshape(jnp.pad(jnp.ravel(x), (0, pad)), (-1, LANE))
            padded_tail = True

    rows, cols = x2d.shape
    vmem_row_bytes = _round_up(cols, LANE) * itemsize
    target_rows = max(sublane,
                      (target_block_bytes // vmem_row_bytes) // sublane * sublane)
    block_rows = _choose_block_rows(rows, sublane, target_rows, cores)
    # VMEM safety clamp: never let a single block exceed ~2x the per-array target.
    if block_rows * vmem_row_bytes > 2 * target_block_bytes:
        block_rows = target_rows
    grid = (pl.cdiv(rows, block_rows),)

    spec = pl.BlockSpec((block_rows, cols), lambda i: (i, 0))

    cost = pl.CostEstimate(
        flops=2 * n,                      # compare + multiply per element
        transcendentals=0,
        bytes_accessed=3 * n * itemsize,  # read x, write y, write mask
    )

    y2d, m2d = pl.pallas_call(
        _relu_mask_kernel,
        out_shape=(
            jax.ShapeDtypeStruct((rows, cols), dtype),
            jax.ShapeDtypeStruct((rows, cols), dtype),
        ),
        grid_spec=pltpu.PrefetchScalarGridSpec(
            num_scalar_prefetch=0,
            grid=grid,
            in_specs=[spec],
            out_specs=[spec, spec],
        ),
        compiler_params=pltpu.CompilerParams(
            dimension_semantics=("parallel",),
            vmem_limit_bytes=vmem_limit,
        ),
        cost_estimate=cost,
    )(x2d)

    if padded_tail:
        y = y2d.reshape(-1)[:n].reshape(orig_shape)
        m = m2d.reshape(-1)[:n].reshape(orig_shape)
    else:
        y = y2d.reshape(orig_shape)  # metadata-only reshape
        m = m2d.reshape(orig_shape)
    return y, m


if __name__ == "__main__":
    def check(x):
        y, mask = relu_with_mask(x)
        jax.block_until_ready((y, mask))
        mask_ref = (x > 0).astype(x.dtype)
        y_ref = x * mask_ref
        assert y.shape == x.shape and mask.shape == x.shape
        assert y.dtype == x.dtype and mask.dtype == x.dtype
        assert jnp.allclose(y, y_ref), "output mismatch"
        assert jnp.allclose(mask, mask_ref), "mask mismatch"

    key = jax.random.PRNGKey(0)
    k1, k2, k3, k4 = jax.random.split(key, 4)

    # NCHW feature map whose flat size is 128-aligned (lane-dense fast path).
    check(jax.random.normal(k1, (2, 4, 16, 16), dtype=jnp.float32))
    # Unaligned flat size: zero-copy full-extent-last-dim path (no pad/slice).
    check(jax.random.normal(k2, (2, 3, 5, 7), dtype=jnp.float32))
    # 1-D unaligned input.
    check(jax.random.normal(k3, (1000,), dtype=jnp.float32))
    # bf16 input (sublane=16 path).
    check(jax.random.normal(k4, (8, 32, 32, 32), dtype=jnp.bfloat16))

    print("KERNEL_OK")
</pallas_src>

<mosaic_0001>
module attributes {stable_mosaic.version = 11 : i64} {
  func.func @_relu_mask_kernel(%arg0: i32, %arg1: memref<16x128xf32, #tpu.memory_space<vmem>>, %arg2: memref<16x128xf32, #tpu.memory_space<vmem>>, %arg3: memref<16x128xf32, #tpu.memory_space<vmem>>) attributes {dimension_semantics = [#tpu.dimension_semantics<parallel>], iteration_bounds = array<i64: 1>, scalar_prefetch = 0 : i64, scratch_operands = 0 : i64, tpu.core_type = #tpu.core_type<tc>, window_params = [{transform_indices = @transform_0, window_bounds = array<i64: 16, 128>}, {transform_indices = @transform_1, window_bounds = array<i64: 16, 128>}, {transform_indices = @transform_2, window_bounds = array<i64: 16, 128>}]} {
    %c0 = arith.constant 0 : index
    %c0_0 = arith.constant 0 : index
    %0 = vector.load %arg1[%c0, %c0_0] : memref<16x128xf32, #tpu.memory_space<vmem>>, vector<16x128xf32>
    %cst = arith.constant 0.000000e+00 : f32
    %1 = vector.broadcast %cst : f32 to vector<16x128xf32>
    %2 = arith.cmpf ogt, %0, %1 : vector<16x128xf32>
    %3 = arith.extui %2 : vector<16x128xi1> to vector<16x128xi32>
    %4 = arith.sitofp %3 : vector<16x128xi32> to vector<16x128xf32>
    %c0_1 = arith.constant 0 : index
    %c0_2 = arith.constant 0 : index
    %5 = vector.load %arg3[%c0_1, %c0_2] : memref<16x128xf32, #tpu.memory_space<vmem>>, vector<16x128xf32>
    tpu.vector_store %arg3[%c0_1, %c0_2], %4 {strides = array<i32>} : memref<16x128xf32, #tpu.memory_space<vmem>>, vector<16x128xf32>,
    %6 = arith.mulf %0, %4 : vector<16x128xf32>
    %c0_3 = arith.constant 0 : index
    %c0_4 = arith.constant 0 : index
    %7 = vector.load %arg2[%c0_3, %c0_4] : memref<16x128xf32, #tpu.memory_space<vmem>>, vector<16x128xf32>
    tpu.vector_store %arg2[%c0_3, %c0_4], %6 {strides = array<i32>} : memref<16x128xf32, #tpu.memory_space<vmem>>, vector<16x128xf32>,
    return
  }
  func.func @transform_0(%arg0: i32) -> (i32, i32) {
    %c0_i32 = arith.constant 0 : i32
    %c0_i32_0 = arith.constant 0 : i32
    return %arg0, %c0_i32 : i32, i32
  }
  func.func @transform_1(%arg0: i32) -> (i32, i32) {
    %c0_i32 = arith.constant 0 : i32
    %c0_i32_0 = arith.constant 0 : i32
    return %arg0, %c0_i32 : i32, i32
  }
  func.func @transform_2(%arg0: i32) -> (i32, i32) {
    %c0_i32 = arith.constant 0 : i32
    %c0_i32_0 = arith.constant 0 : i32
    return %arg0, %c0_i32 : i32, i32
  }
}

</mosaic_0001>

<bundles_post_ra>
// kernel: tpu_custom_call.1
= control target key start
LH: loop header
LB: loop body
LE: loop exit
PB: predicated region body
PF: predicated region fallthrough
CT: control target
= control target key end

     0   :  { %8 = vsyncpa [#allocation3], 0  ;;  %s186_s0 = inlined_call_operand.hbm [shape: f32[16,128], index: 0, kind: input, shape index: {}]   ;;  %s187_s1 = inlined_call_operand.hbm [shape: f32[16,128], index: 1, kind: output, shape index: {0}]   ;;  %s188_s2 = inlined_call_operand.hbm [shape: f32[16,128], index: 2, kind: output, shape index: {1}]  }
   0x1   :  { %9 = vsyncpa [#allocation4], 0 }
   0x2   :  { %10 = vsyncpa [#allocation7], 0  ;;  %s147_s9 = smov [#allocation2]  }
   0x3   :  { %s16_s10 = sshll.u32 %s147_s9, 4  ;;  %s17_s10 = int_to_ptr.vmem [resolvable:$true] %s16_s10 }
   0x4   :  { %s89_s11 = scalar_lea.vmem %s17_s10, 256  ;;  %p94_p1 = scmp.lt.s32.totalorder %s17_s10, %s17_s10 }
   0x5   :  { %p90_p0 = scmp.ne.s32.totalorder %s17_s10, %s89_s11  ;;  %p95_p2 = scmp.lt.s32.totalorder %s89_s11, %s89_s11 }
   0x7   :  { %p96_p3 = por %p95_p2, %p94_p1 }
   0x9   :  { %p97_p4 = pnand %p96_p3, %p90_p0 }
   0xb   :  { %100 = shalt.err (!%p97_p4)
}
   0xc   :  { %s148_s12 = smov 128   ;;  %s149_s13 = smov 8  }
   0xd   :  { %22 = dma.hbm_to_vmem [thread:$0]  %s186_s0, 256, %s17_s10, [#allocation3], %s148_s12, %s148_s12, %s149_s13  }
   0xe   :  { %141 = dma.done.wait [#allocation3], 256  }
   0xf   :  { %142 = vsyncadd [#allocation3], 4294967040  ;;  %s150_s16 = smov [#allocation6]   ;;  %v26_v0 = vld [vmem:[#allocation2] sm:$0xff]  ;;  %v27_v1 = vld [vmem:[#allocation2 + $0x8] sm:$0xff]  ;;  %s151_s18 = smov [#allocation5]  }
  0x10   :  { %s57_s17 = sshll.u32 %s150_s16, 4  ;;  %s45_s19 = sshll.u32 %s151_s18, 4  ;;  %vm28_vm0 = vcmp.gt.f32.partialorder %v26_v0, 0.0  ;;  %vm29_vm1 = vcmp.gt.f32.partialorder %v27_v1, 0.0  ;;  %v152_v2 = vmov 0.0   ;;  %s58_s17 = int_to_ptr.vmem [resolvable:$true] %s57_s17  ;;  %s46_s19 = int_to_ptr.vmem [resolvable:$true] %s45_s19 }
  0x11   :  { %v73_v3 = vsel %vm28_vm0, 1.0, %v152_v2  ;;  %v74_v4 = vsel %vm29_vm1, 1.0, %v152_v2  ;;  %s101_s0 = scalar_lea.vmem %s58_s17, 256  ;;  %p106_p6 = scmp.lt.s32.totalorder %s58_s17, %s58_s17 }
  0x12   :  { %34 = vst [vmem:[#allocation6] sm:$0xff] %v73_v3  ;;  %35 = vst [vmem:[#allocation6 + $0x8] sm:$0xff] %v74_v4  ;;  %v36_v5 = vmul.f32 %v73_v3, %v26_v0  ;;  %v37_v6 = vmul.f32 %v74_v4, %v27_v1  ;;  %p102_p5 = scmp.ne.s32.totalorder %s58_s17, %s101_s0  ;;  %p107_p7 = scmp.lt.s32.totalorder %s101_s0, %s101_s0 }
  0x14   :  { %p108_p8 = por %p107_p7, %p106_p6 }
  0x16   :  { %p109_p9 = pnand %p108_p8, %p102_p5 }
  0x18   :  { %112 = shalt.err (!%p109_p9)
}
  0x19   :  { %63 = dma.vmem_to_hbm [thread:$0]  %s58_s17, 256, %s188_s2, [#allocation7], %s148_s12, %s148_s12, %s149_s13   ;;  %38 = vst [vmem:[#allocation5] sm:$0xff] %v36_v5  ;;  %39 = vst [vmem:[#allocation5 + $0x8] sm:$0xff] %v37_v6 }
  0x1a   :  { %s121_s22 = scalar_lea.vmem %s46_s19, 256  ;;  %p126_p11 = scmp.lt.s32.totalorder %s46_s19, %s46_s19 }
  0x1b   :  { %p122_p10 = scmp.ne.s32.totalorder %s46_s19, %s121_s22  ;;  %p127_p12 = scmp.lt.s32.totalorder %s121_s22, %s121_s22 }
  0x1d   :  { %p128_p13 = por %p127_p12, %p126_p11 }
  0x1f   :  { %p129_p0 = pnand %p128_p13, %p122_p10 }
  0x21   :  { %132 = shalt.err (!%p129_p0)
}
  0x22   :  { %51 = dma.vmem_to_hbm [thread:$0]  %s46_s19, 256, %s187_s1, [#allocation4], %s148_s12, %s148_s12, %s149_s13  }
  0x23   :  { %143 = dma.done.wait [#allocation4], 256  }
  0x24   :  { %144 = vsyncadd [#allocation4], 4294967040 }
  0x25   :  { %145 = dma.done.wait [#allocation7], 256  }
  0x26   :  { %146 = vsyncadd [#allocation7], 4294967040 }
  0x27   :  { %70 = vsyncpa [#allocation3], 1 }
  0x28   :  { %71 = vsyncpa [#allocation4], 1 }
  0x29   :  { %72 = vsyncpa [#allocation7], 1 }

</bundles_post_ra>
